<compile_context>
chip_gen: v5e
topology: v5e:2x2
jax: 0.10.0
libtpu: 0.0.40
codegen_flags: <defaults>
</compile_context>

<pallas_src>
import functools

import jax
import jax.numpy as jnp
from jax.experimental import pallas as pl
from jax.experimental.pallas import tpu as pltpu

_VMEM_LIMIT = 32 * 1024 * 1024  # safe on v5e/v6e (128 MiB) and v7x (64 MiB physical)


def _stats_kernel(x_ref, w1t_ref, b1_ref, w2t_ref, sum_ref, sq_ref, *,
                  m_valid, m_pad):
    """Pass 1: conv1 -> lrelu -> conv2, accumulate per-channel sum / sum-of-squares."""
    i = pl.program_id(0)

    @pl.when(i == 0)
    def _():
        sum_ref[...] = jnp.zeros_like(sum_ref)
        sq_ref[...] = jnp.zeros_like(sq_ref)

    neg = jnp.float32(0.2)
    x = x_ref[...]                                                     # (Cin, TM)

    h1 = jnp.dot(w1t_ref[...], x, preferred_element_type=jnp.float32)  # (NDF, TM)
    h1 = h1 + b1_ref[...]
    h1 = jnp.where(h1 > 0, h1, neg * h1)

    h2 = jnp.dot(w2t_ref[...], h1, preferred_element_type=jnp.float32)  # (2*NDF, TM)

    if m_pad != m_valid:  # mask padded pixels so they don't pollute the batch stats
        tm = x.shape[1]
        pix = i * tm + jax.lax.broadcasted_iota(jnp.int32, (1, tm), 1)
        h2 = jnp.where(pix < m_valid, h2, jnp.float32(0.0))

    # f32 accumulators; reductions over the lane axis (XLU) then accumulate in VMEM.
    sum_ref[...] += jnp.sum(h2, axis=1, keepdims=True)
    sq_ref[...] += jnp.sum(h2 * h2, axis=1, keepdims=True)


def _apply_kernel(x_ref, w1t_ref, b1_ref, w2t_ref, scale_ref, shift_ref, w3_ref,
                  o_ref):
    """Pass 2: recompute conv1/conv2, apply folded BN scale/shift, lrelu, conv3."""
    neg = jnp.float32(0.2)
    x = x_ref[...]                                                     # (Cin, TM)

    h1 = jnp.dot(w1t_ref[...], x, preferred_element_type=jnp.float32)  # (NDF, TM)
    h1 = h1 + b1_ref[...]
    h1 = jnp.where(h1 > 0, h1, neg * h1)

    h2 = jnp.dot(w2t_ref[...], h1, preferred_element_type=jnp.float32)  # (2*NDF, TM)

    # BatchNorm folded to one per-channel FMA: y = h2 * scale + shift.
    y = h2 * scale_ref[...] + shift_ref[...]
    y = jnp.where(y > 0, y, neg * y)

    # conv3 -> lane-dense (1, TM) output slab.
    o_ref[...] = jnp.dot(w3_ref[...], y, preferred_element_type=jnp.float32)


def pixel_discriminator(x_nchw, params, *, tm=2048):
    """x_nchw: (N, Cin, H, W) float32. Returns (N, 1, H, W) float32.

    Forward-pass semantics of PixelDiscriminator with BatchNorm2d in training mode
    (batch statistics); running_mean/running_var buffers are not updated.
    """
    w1, b1, w2, gamma, beta, w3 = params
    n, c_in, h, w = x_nchw.shape
    m = n * h * w
    ndf = w1.shape[1]
    c2 = w2.shape[1]

    # Tile size along the pixel axis: multiple of 128 lanes, no larger than needed.
    tm = max(128, (int(tm) // 128) * 128)
    m_ceil = pl.cdiv(m, 128) * 128
    tm = min(tm, m_ceil)
    m_pad = pl.cdiv(m, tm) * tm
    grid = (m_pad // tm,)

    # NCHW -> (Cin, M): channels on sublanes, pixels on the 128-lane axis.
    x_cm = jnp.transpose(x_nchw, (1, 0, 2, 3)).reshape(c_in, m)
    if m_pad != m:
        x_cm = jnp.pad(x_cm, ((0, 0), (0, m_pad - m)))

    w1t = w1.T.astype(jnp.float32)            # (NDF, Cin)
    w2t = w2.T.astype(jnp.float32)            # (2*NDF, NDF)
    b1c = b1.reshape(ndf, 1).astype(jnp.float32)
    w3r = w3.reshape(1, c2).astype(jnp.float32)

    # ---------------- Pass 1: global per-channel batch statistics ----------------
    stats_kernel = functools.partial(_stats_kernel, m_valid=m, m_pad=m_pad)
    ch_sum, ch_sumsq = pl.pallas_call(
        stats_kernel,
        out_shape=(jax.ShapeDtypeStruct((c2, 1), jnp.float32),
                   jax.ShapeDtypeStruct((c2, 1), jnp.float32)),
        grid_spec=pltpu.PrefetchScalarGridSpec(
            num_scalar_prefetch=0,
            grid=grid,
            in_specs=[
                pl.BlockSpec((c_in, tm), lambda i: (0, i)),
                pl.BlockSpec((ndf, c_in), lambda i: (0, 0)),
                pl.BlockSpec((ndf, 1), lambda i: (0, 0)),
                pl.BlockSpec((c2, ndf), lambda i: (0, 0)),
            ],
            out_specs=(pl.BlockSpec((c2, 1), lambda i: (0, 0)),
                       pl.BlockSpec((c2, 1), lambda i: (0, 0))),
        ),
        compiler_params=pltpu.CompilerParams(
            dimension_semantics=("arbitrary",),      # sequential accumulation
            vmem_limit_bytes=_VMEM_LIMIT),
    )(x_cm, w1t, b1c, w2t)

    # Fold BN into a single per-channel scale/shift (computed once, tiny).
    count = jnp.float32(m)
    mean = ch_sum[:, 0] / count
    var = jnp.maximum(ch_sumsq[:, 0] / count - mean * mean, 0.0)  # clamp cancellation
    scale = gamma.astype(jnp.float32) * jax.lax.rsqrt(var + jnp.float32(1e-5))
    shift = beta.astype(jnp.float32) - mean * scale

    # ---------------- Pass 2: recompute + normalize + conv3 ----------------
    out_flat = pl.pallas_call(
        _apply_kernel,
        out_shape=jax.ShapeDtypeStruct((1, m_pad), jnp.float32),
        grid_spec=pltpu.PrefetchScalarGridSpec(
            num_scalar_prefetch=0,
            grid=grid,
            in_specs=[
                pl.BlockSpec((c_in, tm), lambda i: (0, i)),
                pl.BlockSpec((ndf, c_in), lambda i: (0, 0)),
                pl.BlockSpec((ndf, 1), lambda i: (0, 0)),
                pl.BlockSpec((c2, ndf), lambda i: (0, 0)),
                pl.BlockSpec((c2, 1), lambda i: (0, 0)),
                pl.BlockSpec((c2, 1), lambda i: (0, 0)),
                pl.BlockSpec((1, c2), lambda i: (0, 0)),
            ],
            out_specs=pl.BlockSpec((1, tm), lambda i: (0, i)),
        ),
        compiler_params=pltpu.CompilerParams(
            dimension_semantics=("parallel",),       # shard across v7x's 2 TCs
            vmem_limit_bytes=_VMEM_LIMIT),
    )(x_cm, w1t, b1c, w2t, scale.reshape(c2, 1), shift.reshape(c2, 1), w3r)

    # (1, M_pad) -> (N, 1, H, W)
    out = out_flat[0, :m].reshape(n, h, w)
    return out[:, None, :, :]


def init_params(key, input_nc, ndf):
    """Deterministic synthetic parameters matching PixelDiscriminator shapes.

    Conv weights stored as (Cin, Cout) since all kernels are 1x1.
    BatchNorm gamma/beta follow PyTorch default init (ones / zeros).
    """
    k1, k2, k3, k4 = jax.random.split(key, 4)
    w1 = 0.1 * jax.random.normal(k1, (input_nc, ndf), jnp.float32)
    b1 = 0.1 * jax.random.normal(k2, (ndf,), jnp.float32)
    w2 = 0.1 * jax.random.normal(k3, (ndf, 2 * ndf), jnp.float32)
    gamma = jnp.ones((2 * ndf,), jnp.float32)
    beta = jnp.zeros((2 * ndf,), jnp.float32)
    w3 = 0.1 * jax.random.normal(k4, (2 * ndf, 1), jnp.float32)
    return (w1, b1, w2, gamma, beta, w3)


def _reference(x_nchw, params):
    """Pure-JAX reference (same math as the PyTorch module, no Pallas)."""
    w1, b1, w2, gamma, beta, w3 = params
    n, c_in, h, w = x_nchw.shape
    x = jnp.transpose(x_nchw, (0, 2, 3, 1)).reshape(-1, c_in)
    y = x @ w1 + b1
    y = jnp.where(y > 0, y, 0.2 * y)
    y = y @ w2
    mean = jnp.mean(y, axis=0, keepdims=True)
    var = jnp.mean((y - mean) ** 2, axis=0, keepdims=True)
    y = (y - mean) / jnp.sqrt(var + 1e-5) * gamma + beta
    y = jnp.where(y > 0, y, 0.2 * y)
    y = y @ w3
    return jnp.transpose(y.reshape(n, h, w, 1), (0, 3, 1, 2))


if __name__ == "__main__":
    key = jax.random.PRNGKey(0)
    kx, kp = jax.random.split(key)

    # Small shapes consistent with the module: batch=2, input_nc=4, 16x16, ndf=8.
    batch, input_nc, height, width = 2, 4, 16, 16
    ndf = 8

    x = jax.random.normal(kx, (batch, input_nc, height, width), jnp.float32)
    params = init_params(kp, input_nc, ndf)

    # tm=128 -> M=512 pixels gives a 4-step grid, exercising the tiled two-pass path.
    fwd = jax.jit(functools.partial(pixel_discriminator, tm=128))
    out = jax.block_until_ready(fwd(x, params))

    ref = _reference(x, params)
    assert out.shape == (batch, 1, height, width), out.shape
    assert jnp.allclose(out, ref, atol=1e-4, rtol=1e-4), "mismatch vs reference"

    print("KERNEL_OK")
</pallas_src>

<mosaic_0001>
module attributes {stable_mosaic.version = 11 : i64} {
  func.func @_apply_kernel(%arg0: i32, %arg1: memref<4x128xf32, #tpu.memory_space<vmem>>, %arg2: memref<8x4xf32, #tpu.memory_space<vmem>>, %arg3: memref<8x1xf32, #tpu.memory_space<vmem>>, %arg4: memref<16x8xf32, #tpu.memory_space<vmem>>, %arg5: memref<16x1xf32, #tpu.memory_space<vmem>>, %arg6: memref<16x1xf32, #tpu.memory_space<vmem>>, %arg7: memref<1x16xf32, #tpu.memory_space<vmem>>, %arg8: memref<1x128xf32, #tpu.memory_space<vmem>>) attributes {dimension_semantics = [#tpu.dimension_semantics<parallel>], iteration_bounds = array<i64: 4>, scalar_prefetch = 0 : i64, scratch_operands = 0 : i64, tpu.core_type = #tpu.core_type<tc>, window_params = [{transform_indices = @transform_0, window_bounds = array<i64: 4, 128>}, {pipeline_mode = #tpu.pipeline_mode<synchronous>, transform_indices = @transform_1, window_bounds = array<i64: 8, 4>}, {pipeline_mode = #tpu.pipeline_mode<synchronous>, transform_indices = @transform_2, window_bounds = array<i64: 8, 1>}, {pipeline_mode = #tpu.pipeline_mode<synchronous>, transform_indices = @transform_3, window_bounds = array<i64: 16, 8>}, {pipeline_mode = #tpu.pipeline_mode<synchronous>, transform_indices = @transform_4, window_bounds = array<i64: 16, 1>}, {pipeline_mode = #tpu.pipeline_mode<synchronous>, transform_indices = @transform_5, window_bounds = array<i64: 16, 1>}, {pipeline_mode = #tpu.pipeline_mode<synchronous>, transform_indices = @transform_6, window_bounds = array<i64: 1, 16>}, {transform_indices = @transform_7, window_bounds = array<i64: 1, 128>}]} {
    %c0 = arith.constant 0 : index
    %c0_0 = arith.constant 0 : index
    %0 = vector.load %arg1[%c0, %c0_0] : memref<4x128xf32, #tpu.memory_space<vmem>>, vector<4x128xf32>
    %c0_1 = arith.constant 0 : index
    %c0_2 = arith.constant 0 : index
    %1 = vector.load %arg2[%c0_1, %c0_2] : memref<8x4xf32, #tpu.memory_space<vmem>>, vector<8x4xf32>
    %cst = arith.constant dense<0.000000e+00> : vector<8x128xf32>
    %2 = tpu.matmul %1, %0, %cst {dimension_numbers = #tpu.dot_dimension_numbers<[1], [0], [0], [1], [0, 0, 1, 1], [], []>} : vector<8x4xf32>, vector<4x128xf32>, vector<8x128xf32> -> vector<8x128xf32>
    %c0_3 = arith.constant 0 : index
    %c0_4 = arith.constant 0 : index
    %3 = vector.load %arg3[%c0_3, %c0_4] : memref<8x1xf32, #tpu.memory_space<vmem>>, vector<8x1xf32>
    %4 = vector.broadcast %3 : vector<8x1xf32> to vector<8x128xf32>
    %5 = arith.addf %2, %4 : vector<8x128xf32>
    %cst_5 = arith.constant 0.000000e+00 : f32
    %6 = vector.broadcast %cst_5 : f32 to vector<8x128xf32>
    %7 = arith.cmpf ogt, %5, %6 : vector<8x128xf32>
    %cst_6 = arith.constant 2.000000e-01 : f32
    %8 = vector.broadcast %cst_6 : f32 to vector<8x128xf32>
    %9 = arith.mulf %8, %5 : vector<8x128xf32>
    %10 = arith.select %7, %5, %9 : vector<8x128xi1>, vector<8x128xf32>
    %c0_7 = arith.constant 0 : index
    %c0_8 = arith.constant 0 : index
    %11 = vector.load %arg4[%c0_7, %c0_8] : memref<16x8xf32, #tpu.memory_space<vmem>>, vector<16x8xf32>
    %cst_9 = arith.constant dense<0.000000e+00> : vector<16x128xf32>
    %12 = tpu.matmul %11, %10, %cst_9 {dimension_numbers = #tpu.dot_dimension_numbers<[1], [0], [0], [1], [0, 0, 1, 1], [], []>} : vector<16x8xf32>, vector<8x128xf32>, vector<16x128xf32> -> vector<16x128xf32>
    %c0_10 = arith.constant 0 : index
    %c0_11 = arith.constant 0 : index
    %13 = vector.load %arg5[%c0_10, %c0_11] : memref<16x1xf32, #tpu.memory_space<vmem>>, vector<16x1xf32>
    %14 = vector.broadcast %13 : vector<16x1xf32> to vector<16x128xf32>
    %15 = arith.mulf %12, %14 : vector<16x128xf32>
    %c0_12 = arith.constant 0 : index
    %c0_13 = arith.constant 0 : index
    %16 = vector.load %arg6[%c0_12, %c0_13] : memref<16x1xf32, #tpu.memory_space<vmem>>, vector<16x1xf32>
    %17 = vector.broadcast %16 : vector<16x1xf32> to vector<16x128xf32>
    %18 = arith.addf %15, %17 : vector<16x128xf32>
    %cst_14 = arith.constant 0.000000e+00 : f32
    %19 = vector.broadcast %cst_14 : f32 to vector<16x128xf32>
    %20 = arith.cmpf ogt, %18, %19 : vector<16x128xf32>
    %cst_15 = arith.constant 2.000000e-01 : f32
    %21 = vector.broadcast %cst_15 : f32 to vector<16x128xf32>
    %22 = arith.mulf %21, %18 : vector<16x128xf32>
    %23 = arith.select %20, %18, %22 : vector<16x128xi1>, vector<16x128xf32>
    %c0_16 = arith.constant 0 : index
    %c0_17 = arith.constant 0 : index
    %24 = vector.load %arg7[%c0_16, %c0_17] : memref<1x16xf32, #tpu.memory_space<vmem>>, vector<1x16xf32>
    %cst_18 = arith.constant dense<0.000000e+00> : vector<1x128xf32>
    %25 = tpu.matmul %24, %23, %cst_18 {dimension_numbers = #tpu.dot_dimension_numbers<[1], [0], [0], [1], [0, 0, 1, 1], [], []>} : vector<1x16xf32>, vector<16x128xf32>, vector<1x128xf32> -> vector<1x128xf32>
    %c0_19 = arith.constant 0 : index
    %c0_20 = arith.constant 0 : index
    %26 = vector.load %arg8[%c0_19, %c0_20] : memref<1x128xf32, #tpu.memory_space<vmem>>, vector<1x128xf32>
    tpu.vector_store %arg8[%c0_19, %c0_20], %25 {strides = array<i32>} : memref<1x128xf32, #tpu.memory_space<vmem>>, vector<1x128xf32>,
    return
  }
  func.func @transform_0(%arg0: i32) -> (i32, i32) {
    %c0_i32 = arith.constant 0 : i32
    %c0_i32_0 = arith.constant 0 : i32
    return %c0_i32, %arg0 : i32, i32
  }
  func.func @transform_1(%arg0: i32) -> (i32, i32) {
    %c0_i32 = arith.constant 0 : i32
    %c0_i32_0 = arith.constant 0 : i32
    %c0_i32_1 = arith.constant 0 : i32
    return %c0_i32, %c0_i32_0 : i32, i32
  }
  func.func @transform_2(%arg0: i32) -> (i32, i32) {
    %c0_i32 = arith.constant 0 : i32
    %c0_i32_0 = arith.constant 0 : i32
    %c0_i32_1 = arith.constant 0 : i32
    return %c0_i32, %c0_i32_0 : i32, i32
  }
  func.func @transform_3(%arg0: i32) -> (i32, i32) {
    %c0_i32 = arith.constant 0 : i32
    %c0_i32_0 = arith.constant 0 : i32
    %c0_i32_1 = arith.constant 0 : i32
    return %c0_i32, %c0_i32_0 : i32, i32
  }
  func.func @transform_4(%arg0: i32) -> (i32, i32) {
    %c0_i32 = arith.constant 0 : i32
    %c0_i32_0 = arith.constant 0 : i32
    %c0_i32_1 = arith.constant 0 : i32
    return %c0_i32, %c0_i32_0 : i32, i32
  }
  func.func @transform_5(%arg0: i32) -> (i32, i32) {
    %c0_i32 = arith.constant 0 : i32
    %c0_i32_0 = arith.constant 0 : i32
    %c0_i32_1 = arith.constant 0 : i32
    return %c0_i32, %c0_i32_0 : i32, i32
  }
  func.func @transform_6(%arg0: i32) -> (i32, i32) {
    %c0_i32 = arith.constant 0 : i32
    %c0_i32_0 = arith.constant 0 : i32
    %c0_i32_1 = arith.constant 0 : i32
    return %c0_i32, %c0_i32_0 : i32, i32
  }
  func.func @transform_7(%arg0: i32) -> (i32, i32) {
    %c0_i32 = arith.constant 0 : i32
    %c0_i32_0 = arith.constant 0 : i32
    return %c0_i32, %arg0 : i32, i32
  }
}

module attributes {stable_mosaic.version = 11 : i64} {
  func.func @_stats_kernel(%arg0: i32, %arg1: memref<4x128xf32, #tpu.memory_space<vmem>>, %arg2: memref<8x4xf32, #tpu.memory_space<vmem>>, %arg3: memref<8x1xf32, #tpu.memory_space<vmem>>, %arg4: memref<16x8xf32, #tpu.memory_space<vmem>>, %arg5: memref<16x1xf32, #tpu.memory_space<vmem>>, %arg6: memref<16x1xf32, #tpu.memory_space<vmem>>) attributes {dimension_semantics = [#tpu.dimension_semantics<arbitrary>], iteration_bounds = array<i64: 4>, scalar_prefetch = 0 : i64, scratch_operands = 0 : i64, tpu.core_type = #tpu.core_type<tc>, window_params = [{transform_indices = @transform_0, window_bounds = array<i64: 4, 128>}, {pipeline_mode = #tpu.pipeline_mode<synchronous>, transform_indices = @transform_1, window_bounds = array<i64: 8, 4>}, {pipeline_mode = #tpu.pipeline_mode<synchronous>, transform_indices = @transform_2, window_bounds = array<i64: 8, 1>}, {pipeline_mode = #tpu.pipeline_mode<synchronous>, transform_indices = @transform_3, window_bounds = array<i64: 16, 8>}, {pipeline_mode = #tpu.pipeline_mode<synchronous>, transform_indices = @transform_4, window_bounds = array<i64: 16, 1>}, {pipeline_mode = #tpu.pipeline_mode<synchronous>, transform_indices = @transform_5, window_bounds = array<i64: 16, 1>}]} {
    %c0_i32 = arith.constant 0 : i32
    %0 = arith.cmpi eq, %arg0, %c0_i32 : i32
    %1 = arith.extui %0 : i1 to i32
    %c0_i32_0 = arith.constant 0 : i32
    %2 = arith.cmpi ne, %1, %c0_i32_0 : i32
    scf.if %2 {
      %cst_21 = arith.constant 0.000000e+00 : f32
      %27 = vector.broadcast %cst_21 : f32 to vector<16x1xf32>
      %c0_22 = arith.constant 0 : index
      %c0_23 = arith.constant 0 : index
      %28 = vector.load %arg5[%c0_22, %c0_23] : memref<16x1xf32, #tpu.memory_space<vmem>>, vector<16x1xf32>
      tpu.vector_store %arg5[%c0_22, %c0_23], %27 {strides = array<i32>} : memref<16x1xf32, #tpu.memory_space<vmem>>, vector<16x1xf32>,
      %cst_24 = arith.constant 0.000000e+00 : f32
      %29 = vector.broadcast %cst_24 : f32 to vector<16x1xf32>
      %c0_25 = arith.constant 0 : index
      %c0_26 = arith.constant 0 : index
      %30 = vector.load %arg6[%c0_25, %c0_26] : memref<16x1xf32, #tpu.memory_space<vmem>>, vector<16x1xf32>
      tpu.vector_store %arg6[%c0_25, %c0_26], %29 {strides = array<i32>} : memref<16x1xf32, #tpu.memory_space<vmem>>, vector<16x1xf32>,
    } else {
    }
    %c0 = arith.constant 0 : index
    %c0_1 = arith.constant 0 : index
    %3 = vector.load %arg1[%c0, %c0_1] : memref<4x128xf32, #tpu.memory_space<vmem>>, vector<4x128xf32>
    %c0_2 = arith.constant 0 : index
    %c0_3 = arith.constant 0 : index
    %4 = vector.load %arg2[%c0_2, %c0_3] : memref<8x4xf32, #tpu.memory_space<vmem>>, vector<8x4xf32>
    %cst = arith.constant dense<0.000000e+00> : vector<8x128xf32>
    %5 = tpu.matmul %4, %3, %cst {dimension_numbers = #tpu.dot_dimension_numbers<[1], [0], [0], [1], [0, 0, 1, 1], [], []>} : vector<8x4xf32>, vector<4x128xf32>, vector<8x128xf32> -> vector<8x128xf32>
    %c0_4 = arith.constant 0 : index
    %c0_5 = arith.constant 0 : index
    %6 = vector.load %arg3[%c0_4, %c0_5] : memref<8x1xf32, #tpu.memory_space<vmem>>, vector<8x1xf32>
    %7 = vector.broadcast %6 : vector<8x1xf32> to vector<8x128xf32>
    %8 = arith.addf %5, %7 : vector<8x128xf32>
    %cst_6 = arith.constant 0.000000e+00 : f32
    %9 = vector.broadcast %cst_6 : f32 to vector<8x128xf32>
    %10 = arith.cmpf ogt, %8, %9 : vector<8x128xf32>
    %cst_7 = arith.constant 2.000000e-01 : f32
    %11 = vector.broadcast %cst_7 : f32 to vector<8x128xf32>
    %12 = arith.mulf %11, %8 : vector<8x128xf32>
    %13 = arith.select %10, %8, %12 : vector<8x128xi1>, vector<8x128xf32>
    %c0_8 = arith.constant 0 : index
    %c0_9 = arith.constant 0 : index
    %14 = vector.load %arg4[%c0_8, %c0_9] : memref<16x8xf32, #tpu.memory_space<vmem>>, vector<16x8xf32>
    %cst_10 = arith.constant dense<0.000000e+00> : vector<16x128xf32>
    %15 = tpu.matmul %14, %13, %cst_10 {dimension_numbers = #tpu.dot_dimension_numbers<[1], [0], [0], [1], [0, 0, 1, 1], [], []>} : vector<16x8xf32>, vector<8x128xf32>, vector<16x128xf32> -> vector<16x128xf32>
    %c0_11 = arith.constant 0 : index
    %c0_12 = arith.constant 0 : index
    %16 = vector.load %arg5[%c0_11, %c0_12] : memref<16x1xf32, #tpu.memory_space<vmem>>, vector<16x1xf32>
    %cst_13 = arith.constant dense<0.000000e+00> : vector<16xf32>
    %17 = vector.multi_reduction <add>, %15, %cst_13 [1] : vector<16x128xf32> to vector<16xf32>
    %18 = vector.shape_cast %17 : vector<16xf32> to vector<16x1xf32>
    %19 = arith.addf %16, %18 : vector<16x1xf32>
    %c0_14 = arith.constant 0 : index
    %c0_15 = arith.constant 0 : index
    %20 = vector.load %arg5[%c0_14, %c0_15] : memref<16x1xf32, #tpu.memory_space<vmem>>, vector<16x1xf32>
    tpu.vector_store %arg5[%c0_14, %c0_15], %19 {strides = array<i32>} : memref<16x1xf32, #tpu.memory_space<vmem>>, vector<16x1xf32>,
    %c0_16 = arith.constant 0 : index
    %c0_17 = arith.constant 0 : index
    %21 = vector.load %arg6[%c0_16, %c0_17] : memref<16x1xf32, #tpu.memory_space<vmem>>, vector<16x1xf32>
    %22 = arith.mulf %15, %15 : vector<16x128xf32>
    %cst_18 = arith.constant dense<0.000000e+00> : vector<16xf32>
    %23 = vector.multi_reduction <add>, %22, %cst_18 [1] : vector<16x128xf32> to vector<16xf32>
    %24 = vector.shape_cast %23 : vector<16xf32> to vector<16x1xf32>
    %25 = arith.addf %21, %24 : vector<16x1xf32>
    %c0_19 = arith.constant 0 : index
    %c0_20 = arith.constant 0 : index
    %26 = vector.load %arg6[%c0_19, %c0_20] : memref<16x1xf32, #tpu.memory_space<vmem>>, vector<16x1xf32>
    tpu.vector_store %arg6[%c0_19, %c0_20], %25 {strides = array<i32>} : memref<16x1xf32, #tpu.memory_space<vmem>>, vector<16x1xf32>,
    return
  }
  func.func @transform_0(%arg0: i32) -> (i32, i32) {
    %c0_i32 = arith.constant 0 : i32
    %c0_i32_0 = arith.constant 0 : i32
    return %c0_i32, %arg0 : i32, i32
  }
  func.func @transform_1(%arg0: i32) -> (i32, i32) {
    %c0_i32 = arith.constant 0 : i32
    %c0_i32_0 = arith.constant 0 : i32
    %c0_i32_1 = arith.constant 0 : i32
    return %c0_i32, %c0_i32_0 : i32, i32
  }
  func.func @transform_2(%arg0: i32) -> (i32, i32) {
    %c0_i32 = arith.constant 0 : i32
    %c0_i32_0 = arith.constant 0 : i32
    %c0_i32_1 = arith.constant 0 : i32
    return %c0_i32, %c0_i32_0 : i32, i32
  }
  func.func @transform_3(%arg0: i32) -> (i32, i32) {
    %c0_i32 = arith.constant 0 : i32
    %c0_i32_0 = arith.constant 0 : i32
    %c0_i32_1 = arith.constant 0 : i32
    return %c0_i32, %c0_i32_0 : i32, i32
  }
  func.func @transform_4(%arg0: i32) -> (i32, i32) {
    %c0_i32 = arith.constant 0 : i32
    %c0_i32_0 = arith.constant 0 : i32
    %c0_i32_1 = arith.constant 0 : i32
    return %c0_i32, %c0_i32_0 : i32, i32
  }
  func.func @transform_5(%arg0: i32) -> (i32, i32) {
    %c0_i32 = arith.constant 0 : i32
    %c0_i32_0 = arith.constant 0 : i32
    %c0_i32_1 = arith.constant 0 : i32
    return %c0_i32, %c0_i32_0 : i32, i32
  }
}

</mosaic_0001>

<bundles_post_ra>
// kernel: squeeze.5
= control target key start
LH: loop header
LB: loop body
LE: loop exit
PB: predicated region body
PF: predicated region fallthrough
CT: control target
= control target key end

     0   :  { %s130_s0 = inlined_call_operand.vmem [shape: f32[512], index: 0, kind: input, shape index: {}]   ;;  %s131_s1 = inlined_call_operand.hbm [shape: f32[2,1,16,16], index: 1, kind: output, shape index: {}]  }
   0x1   :  { %v5_v0 = vld [vmem:[%s130_s0] sm:$0xf] }
   0x2   :  { %6 = vst [vmem:[#allocation2] sm:$0xf] %v5_v0 }
   0x3   :  { %2 = vsyncpa [#allocation1], 0  ;;  %s98_s0 = smov 112   ;;  %s99_s8 = smov 80   ;;  %vm8_vm0 = vcmask 130048  }
   0x4   :  { %s100_s9 = smov 48   ;;  %s101_s10 = smov 96  }
   0x5   :  { %s102_s11 = smov 64   ;;  %s103_s12 = smov 32  }
   0x6   :  { %s104_s13 = smov 16   ;;  %s105_s14 = smov [#allocation0]  }
   0x7   :  { %s55_s15 = sshll.u32 %s105_s14, 4  ;;  %s57_s1 = sshll.u32 %s131_s1, 4  ;;  %s56_s15 = int_to_ptr.vmem [resolvable:$true] %s55_s15  ;;  %s58_s1 = int_to_ptr.hbm [resolvable:$true] %s57_s1 }
   0x9   :  { %v10_v1 = vld [vmem:[#allocation2] sm:$0xf]  }
   0xa   :  { %v22_v2 = vld [vmem:[#allocation2] sm:$0xf]   ;;  %11 = vrot.lane.b32.xlu0 %v10_v1, %s98_s0 }
   0xb   :  { %23 = vrot.lane.b32.xlu1 %v22_v2, %s99_s8  ;;  %v34_v3 = vld [vmem:[#allocation2] sm:$0xf]  }
   0xc   :  { %35 = vrot.lane.b32.xlu2 %v34_v3, %s100_s9  ;;  %v16_v4 = vld [vmem:[#allocation2] sm:$0xf]  }
   0xd   :  { %v28_v5 = vld [vmem:[#allocation2] sm:$0xf]  }
   0xe   :  { %v40_v6 = vld [vmem:[#allocation2] sm:$0xf]  }
   0xf   :  { %v46_v7 = vld [vmem:[#allocation2] sm:$0xf]  }
  0x10   :  { %v7_v9 = vld [vmem:[#allocation2] sm:$0xf]  }
  0x11   :  { %9 = vst.msk [vmem:[#allocation0] ss:$8 sm:$0xf] %vm8_vm0, %v7_v9  }
  0x12   :  { %17 = vrot.lane.b32.xlu0 %v16_v4, %s101_s10 }
  0x13   :  { %29 = vrot.lane.b32.xlu1 %v28_v5, %s102_s11 }
  0x14   :  { %41 = vrot.lane.b32.xlu2 %v40_v6, %s103_s12 }
  0x1a   :  { %47 = vrot.lane.b32.xlu0 %v46_v7, %s104_s13 }
  0x66   :  { %v36_v8 = vpop.permute.xlu2 %35  }
  0x67   :  { %39 = vst.msk [vmem:[#allocation0 + $0x5] ss:$8 sm:$0xf] %vm8_vm0, %v36_v8  }
  0x6e   :  { %v42_v10 = vpop.permute.xlu2 %41  }
  0x6f   :  { %45 = vst.msk [vmem:[#allocation0 + $0x6] ss:$8 sm:$0xf] %vm8_vm0, %v42_v10  }
  0x7c   :  { %v12_v11 = vpop.permute.xlu0 %11  }
  0x7d   :  { %v24_v12 = vpop.permute.xlu1 %23   ;;  %15 = vst.msk [vmem:[#allocation0 + $0x1] ss:$8 sm:$0xf] %vm8_vm0, %v12_v11  }
  0x7e   :  { %27 = vst.msk [vmem:[#allocation0 + $0x3] ss:$8 sm:$0xf] %vm8_vm0, %v24_v12  }
  0x84   :  { %v18_v13 = vpop.permute.xlu0 %17  }
  0x85   :  { %v30_v14 = vpop.permute.xlu1 %29   ;;  %21 = vst.msk [vmem:[#allocation0 + $0x2] ss:$8 sm:$0xf] %vm8_vm0, %v18_v13  }
  0x86   :  { %33 = vst.msk [vmem:[#allocation0 + $0x4] ss:$8 sm:$0xf] %vm8_vm0, %v30_v14  }
  0x8c   :  { %v48_v15 = vpop.permute.xlu0 %47  }
  0x8d   :  { %51 = vst.msk [vmem:[#allocation0 + $0x7] ss:$8 sm:$0xf] %vm8_vm0, %v48_v15  }
  0x8e   :  { %60 = dma.vmem_to_hbm [thread:$0]  %s56_s15, 512, %s58_s1, [#allocation1]  }
  0x8f   :  { %96 = dma.done.wait [#allocation1], 512  }
  0x90   :  { %97 = vsyncadd [#allocation1], 4294966784 }
  0x91   :  { %63 = vsyncpa [#allocation1], 1 }

// kernel: pixel_discriminator.2
= control target key start
LH: loop header
LB: loop body
LE: loop exit
PB: predicated region body
PF: predicated region fallthrough
CT: control target
= control target key end

     0   :  { %s406_s18 = smov 0   ;;  %s468_s0 = inlined_call_operand.vmem [shape: f32[4,512], index: 0, kind: input, shape index: {}]   ;;  %s469_s1 = inlined_call_operand.vmem [shape: f32[8,4], index: 1, kind: input, shape index: {}]   ;;  %s470_s2 = inlined_call_operand.vmem [shape: f32[8,1], index: 2, kind: input, shape index: {}]   ;;  %s471_s3 = inlined_call_operand.vmem [shape: f32[16,8], index: 3, kind: input, shape index: {}]   ;;  %s472_s4 = inlined_call_operand.vmem [shape: f32[16,1], index: 4, kind: output, shape index: {0}]   ;;  %s473_s5 = inlined_call_operand.vmem [shape: f32[16,1], index: 5, kind: output, shape index: {1}]  }
   0x1 LB: > { %s342_s19 = sadd.s32 4294967295, %s372_s18   ;;  %p345_p0 = scmp.ge.s32.totalorder %s372_s18, 1  ;;  %s372_s18 = sphi %s406_s18, %s16_s18  }
   0x2   : > { %p179_p1 = scmp.lt.s32.totalorder %s372_s18, 5 }
   0x4   : > { %p180_p2 = pnand %p345_p0, %p179_p1 }
   0x5   : > { %p201_p3 = scmp.lt.s32.totalorder (!%p180_p2), %s342_s19, 3  ;;  %p347_p4 = scmp.ne.s32.totalorder (!%p180_p2), %s342_s19, 0 }
   0x6   : > { %183 = sbr.rel (%p180_p2) target bundleno = 415 (0x19f), region = 36 }
   0xb   : > { %s202_s20 = scalar_select %p201_p3, %s342_s19, 3 }
   0xc   : > { %208 = sbr.rel (%p347_p4) target bundleno = 22 (0x16), region = 40 }
   0xd   : > { %s346_s21 = sshll.u32 %s202_s20, 2 }
   0xe   : > { %s204_s24 = scalar_lea.vmem %s468_s0, %s346_s21 }
  0x11   : > { %vm209_vm0 = vcmask 7168   ;;  %v374_v0 = vmov 0.0  }
  0x12   : > { %210 = vst.msk [vmem:[%s472_s4] sm:$0xff] %vm209_vm0, %v374_v0 }
  0x13   : > { %211 = vst.msk [vmem:[%s472_s4 + $0x8] sm:$0xff] %vm209_vm0, %v374_v0 }
  0x14   : > { %212 = vst.msk [vmem:[%s473_s5] sm:$0xff] %vm209_vm0, %v374_v0 }
  0x15   : > { %213 = vst.msk [vmem:[%s473_s5 + $0x8] sm:$0xff] %vm209_vm0, %v374_v0 }
  0x16 PF: > { %v214_v1 = vld [vmem:[%s204_s24] sm:$0xf]  ;;  %vm226_vm1 = vcmask 1043456   ;;  %vm222_vm2 = vcmask 31744   ;;  %v375_v3 = vmov 0   ;;  %v254_v9 = vld [vmem:[%s471_s3 + $0x8] sm:$0xff] }
  0x17   : > { %v215_v2 = vld [vmem:[%s469_s1] sm:$0xff]  ;;  %348 = vmatpush.msk.msra.mxu0 %vm226_vm1, %v214_v1  ;;  %365 = vset.pattern.permute.xlu0 %v375_v3  ;;  %vm255_vm4 = vcmask 64512   ;;  %vm293_vm5 = vcmask 7168  }
  0x18   : > { %v216_v4 = vld [vmem:[%s470_s2] sm:$0xff]  ;;  %349 = vmatmul.msk.f32.vlgmr.msra.gmra.mxu0 %vm222_vm2, %v215_v2 }
  0x19   : > { %219 = vperm.xlu0 %365, %v216_v4   ;;  %v253_v10 = vld [vmem:[%s471_s3] sm:$0xff] }
  0x1a   : > { %v285_v16 = vld [vmem:[%s472_s4] sm:$0xff]  ;;  %v286_v19 = vld [vmem:[%s472_s4 + $0x8] sm:$0xff] }
  0x1b   : > { %v296_v25 = vld [vmem:[%s473_s5] sm:$0xff] }
  0x1c   : > { %v297_v21 = vld [vmem:[%s473_s5 + $0x8] sm:$0xff] }
  0x8b   : > { %v220_v5 = vpop.permute.xlu0 %219 }
  0x95   : > { %v247_v6 = vpop.f32.mrf.mxu0 }
  0x96   : > { %v248_v7 = vadd.f32 %v247_v6, %v220_v5 }
  0x98   : > { %vm250_vm3 = vcmp.gt.f32.partialorder %v248_v7, 0.0  ;;  %v251_v8 = vmul.f32 0.2, %v248_v7 }
  0x9a   : > { %v252_v11 = vsel %vm250_vm3, %v248_v7, %v251_v8 }
  0x9b   : > { %277 = vmatpush.msra.mxu1 %v252_v11  ;;  %354 = vmatpush.msra.mxu2 %v252_v11 }
  0x9c   : > { %351 = vmatmul.msk.f32.vlgmr.msra.gmra.mxu2 %vm255_vm4, %v254_v9  ;;  %350 = vmatmul.msk.f32.vlgmr.msra.gmra.mxu1 %vm255_vm4, %v253_v10 }
 0x119   : > { %v279_v12 = vpop.f32.mrf.mxu1 }
 0x11a   : > { %287 = vadd.xlane.f32.xlu0 %v279_v12  ;;  %v298_v15 = vmul.f32 %v279_v12, %v279_v12 }
 0x11f   : > { %v282_v13 = vpop.f32.mrf.mxu2 }
 0x120   : > { %289 = vadd.xlane.f32.xlu1 %v282_v13  ;;  %v299_v14 = vmul.f32 %v282_v13, %v282_v13 }
 0x122   : > { %302 = vadd.xlane.f32.xlu2 %v299_v14 }
 0x128   : > { %300 = vadd.xlane.f32.xlu1 %v298_v15 }
 0x18d   : > { %v288_v17 = vpop.xlane.xlu0 %287 }
 0x18e   : > { %v291_v18 = vadd.f32 %v288_v17, %v285_v16 }
 0x190   : > { %294 = vst.msk [vmem:[%s472_s4] sm:$0xff] %vm293_vm5, %v291_v18 }
 0x193   : > { %v290_v20 = vpop.xlane.xlu1 %289 }
 0x194   : > { %v292_v22 = vadd.f32 %v290_v20, %v286_v19 }
 0x195   : > { %v303_v23 = vpop.xlane.xlu2 %302 }
 0x196   : > { %295 = vst.msk [vmem:[%s472_s4 + $0x8] sm:$0xff] %vm293_vm5, %v292_v22  ;;  %v305_v24 = vadd.f32 %v303_v23, %v297_v21 }
 0x198   : > { %307 = vst.msk [vmem:[%s473_s5 + $0x8] sm:$0xff] %vm293_vm5, %v305_v24 }
 0x19b   : > { %v301_v26 = vpop.xlane.xlu1 %300 }
 0x19c   : > { %v304_v27 = vadd.f32 %v301_v26, %v296_v25 }
 0x19e   : > { %306 = vst.msk [vmem:[%s473_s5] sm:$0xff] %vm293_vm5, %v304_v27 }
 0x19f PF: > { %s16_s18 = sadd.s32 1, %s372_s18  }
 0x1a0   : > { %p13_p5 = scmp.ge.s32.totalorder %s16_s18, 6  }
 0x1a2   :  { %15 = sbr.rel (!%p13_p5) target bundleno = 1 (0x1), region = 74 }

// kernel: pixel_discriminator.3
= control target key start
LH: loop header
LB: loop body
LE: loop exit
PB: predicated region body
PF: predicated region fallthrough
CT: control target
= control target key end

     0   :  { %s525_s24 = smov 0   ;;  %s573_s0 = inlined_call_operand.vmem [shape: f32[4,512], index: 0, kind: input, shape index: {}]   ;;  %s574_s1 = inlined_call_operand.vmem [shape: f32[8,4], index: 1, kind: input, shape index: {}]   ;;  %s575_s2 = inlined_call_operand.vmem [shape: f32[8,1], index: 2, kind: input, shape index: {}]   ;;  %s576_s3 = inlined_call_operand.vmem [shape: f32[16,8], index: 3, kind: input, shape index: {}]   ;;  %s577_s4 = inlined_call_operand.vmem [shape: f32[16,1], index: 4, kind: input, shape index: {}]   ;;  %s578_s5 = inlined_call_operand.vmem [shape: f32[16,1], index: 5, kind: input, shape index: {}]   ;;  %s579_s6 = inlined_call_operand.vmem [shape: f32[1,16], index: 6, kind: input, shape index: {}]   ;;  %s580_s7 = inlined_call_operand.vmem [shape: f32[1,512], index: 7, kind: output, shape index: {}]  }
   0x1 LB: > { %s450_s25 = sadd.s32 4294967295, %s482_s24   ;;  %p454_p0 = scmp.ge.s32.totalorder %s482_s24, 1  ;;  %s482_s24 = sphi %s525_s24, %s17_s24  }
   0x2   : > { %p236_p1 = scmp.lt.s32.totalorder %s482_s24, 5 }
   0x4   : > { %p237_p2 = pnand %p454_p0, %p236_p1 }
   0x5   : > { %p265_p3 = scmp.lt.s32.totalorder (!%p237_p2), %s450_s25, 3 }
   0x6   : > { %240 = sbr.rel (%p237_p2) target bundleno = 423 (0x1a7), region = 48 }
   0xb   : > { %v274_v0 = vld [vmem:[%s575_s2] sm:$0xff]  ;;  %v484_v1 = vmov 0   ;;  %s582_s25 = smov (!%p265_p3, %s450_s25), 3  ;;  %vm284_vm0 = vcmask 1043456   ;;  %vm280_vm1 = vcmask 31744   ;;  %v344_v4 = vld [vmem:[%s577_s4 + $0x8] sm:$0xff] }
   0xc   : > { %473 = vset.pattern.permute.xlu0 %v484_v1  ;;  %474 = vset.pattern.permute.xlu1 %v484_v1  ;;  %s455_s28 = sshll.u32 %s582_s25, 2  ;;  %v273_v2 = vld [vmem:[%s574_s1] sm:$0xff]  ;;  %v358_v7 = vld [vmem:[%s578_s5 + $0x8] sm:$0xff]  ;;  %vm313_vm3 = vcmask 64512   ;;  %vm378_vm6 = vcmask 130048   ;;  %s271_s29 = scalar_lea.vmem %s580_s7, %s582_s25 }
   0xd   : > { %277 = vperm.xlu0 %473, %v274_v0   ;;  %475 = vset.pattern.permute.xlu2 %v484_v1  ;;  %s268_s8 = scalar_lea.vmem %s573_s0, %s455_s28  ;;  %v343_v5 = vld [vmem:[%s577_s4] sm:$0xff]  ;;  %v312_v13 = vld [vmem:[%s576_s3 + $0x8] sm:$0xff] }
   0xe   : > { %v272_v3 = vld [vmem:[%s268_s8] sm:$0xf]  ;;  %347 = vperm.xlu1 %474, %v343_v5  }
   0xf   : > { %456 = vmatpush.msk.msra.mxu0 %vm284_vm0, %v272_v3  ;;  %v357_v6 = vld [vmem:[%s578_s5] sm:$0xff] }
  0x10   : > { %457 = vmatmul.msk.f32.vlgmr.msra.gmra.mxu0 %vm280_vm1, %v273_v2  ;;  %361 = vperm.xlu2 %475, %v357_v6   ;;  %v311_v12 = vld [vmem:[%s576_s3] sm:$0xff] }
  0x11   : > { %v377_v28 = vld [vmem:[%s579_s6] sm:$0x1] }
  0x15   : > { %352 = vperm.xlu0 %473, %v344_v4  }
  0x16   : > { %366 = vperm.xlu1 %474, %v358_v7  }
  0x6a   : > { %v362_v18 = vpop.permute.xlu2 %361 }
  0x7f   : > { %v278_v8 = vpop.permute.xlu0 %277 }
  0x80   : > { %v348_v15 = vpop.permute.xlu1 %347 }
  0x87   : > { %v353_v19 = vpop.permute.xlu0 %352 }
  0x88   : > { %v367_v23 = vpop.permute.xlu1 %366 }
  0x8d   : > { %v305_v9 = vpop.f32.mrf.mxu0 }
  0x8e   : > { %v306_v10 = vadd.f32 %v305_v9, %v278_v8 }
  0x90   : > { %vm308_vm2 = vcmp.gt.f32.partialorder %v306_v10, 0.0  ;;  %v309_v11 = vmul.f32 0.2, %v306_v10 }
  0x92   : > { %v310_v14 = vsel %vm308_vm2, %v306_v10, %v309_v11 }
  0x93   : > { %335 = vmatpush.msra.mxu1 %v310_v14  ;;  %463 = vmatpush.msra.mxu3 %v310_v14 }
  0x94   : > { %458 = vmatmul.msk.f32.vlgmr.msra.gmra.mxu1 %vm313_vm3, %v311_v12  ;;  %459 = vmatmul.msk.f32.vlgmr.msra.gmra.mxu3 %vm313_vm3, %v312_v13 }
 0x111   : > { %v337_v16 = vpop.f32.mrf.mxu1 }
 0x112   : > { %v355_v17 = vmul.f32 %v348_v15, %v337_v16 }
 0x114   : > { %v369_v21 = vadd.f32 %v362_v18, %v355_v17 }
 0x116   : > { %v373_v26 = vmul.f32 0.2, %v369_v21  ;;  %vm371_vm5 = vcmp.gt.f32.partialorder %v369_v21, 0.0 }
 0x117   : > { %v340_v20 = vpop.f32.mrf.mxu3 }
 0x118   : > { %v356_v22 = vmul.f32 %v353_v19, %v340_v20  ;;  %v375_v29 = vsel %vm371_vm5, %v369_v21, %v373_v26 }
 0x11a   : > { %v370_v24 = vadd.f32 %v367_v23, %v356_v22 }
 0x11c   : > { %vm372_vm4 = vcmp.gt.f32.partialorder %v370_v24, 0.0  ;;  %v374_v25 = vmul.f32 0.2, %v370_v24 }
 0x11e   : > { %v376_v27 = vsel %vm372_vm4, %v370_v24, %v374_v25 }
 0x11f   : > { %396 = vmatpush.msra.mxu2 %v376_v27 }
 0x121   : > { %397 = vmatpush.msra.mxu2 %v375_v29 }
 0x122   : > { %460 = vmatmul.msk.f32.vlgmr.msra.gmra.mxu2 %vm378_vm6, %v377_v28 }
 0x1a5   : > { %v399_v30 = vpop.f32.mrf.mxu2 }
 0x1a6   : > { %402 = vst [vmem:[%s271_s29] sm:$0x1] %v399_v30 }
 0x1a7 PF: > { %s17_s24 = sadd.s32 1, %s482_s24  }
 0x1a8   : > { %p14_p4 = scmp.ge.s32.totalorder %s17_s24, 6  }
 0x1aa   :  { %16 = sbr.rel (!%p14_p4) target bundleno = 1 (0x1), region = 78 }

</bundles_post_ra>
